<compile_context>
chip_gen: v5e
topology: v5e:2x2
jax: 0.10.0
libtpu: 0.0.40
codegen_flags: <defaults>
</compile_context>

<pallas_src>
import functools

import jax
import jax.numpy as jnp
from jax.experimental import pallas as pl
from jax.experimental.pallas import tpu as pltpu

# TODO(synk): ConceptNet (encode_concepts=True path) is not defined in the
# provided code; we model encode_concepts=False, so z == x.


def _round_up(n, m):
    return ((n + m - 1) // m) * m


# ----------------------------- Pallas kernel --------------------------------
def _taylor_kernel(x_ref, wall_ref, w2_ref, const_ref, out_ref, *, opad, kk):
    # x arrives in its native dtype; cast right before the MXU feed so the
    # wrapper never does a separate pad/cast HBM pass.
    x = x_ref[...].astype(wall_ref.dtype)                              # (TB, F)

    # Single fused MXU pass over [W1 | I2[1]^T-expanded | I2[0]^T-expanded].
    full = jnp.dot(x, wall_ref[...],
                   preferred_element_type=jnp.float32)                 # (TB, opad+2*kk)

    # 128-aligned static lane slices (layout-free).
    y = full[:, :opad]                                                 # order-1 partial
    a = full[:, opad:opad + kk]                                        # A[:, k//R]
    b = full[:, opad + kk:opad + 2 * kk]                               # B[:, k%R]

    # Lane-dense Khatri-Rao: plain VPU elementwise multiply, no XLU relayout.
    kron = a * b                                                       # (TB, kk) f32

    y = y + jnp.dot(kron.astype(w2_ref.dtype), w2_ref[...],
                    preferred_element_type=jnp.float32)                # (TB, opad)
    y = y + const_ref[...]                                             # broadcast add

    # Store only the real O output lanes (masked vst beats 32x padded DMA).
    out_ref[...] = y[:, :out_ref.shape[-1]].astype(out_ref.dtype)


# ------------------------------ Wrapper --------------------------------------
def taylornet_forward(x, params, *, num_outputs, compute_dtype=jnp.bfloat16,
                      out_dtype=None, block_batch=256):
    """Pallas TaylorNet forward. Returns (output, z) like TaylorNet.forward."""
    z = x  # encode_concepts=False (see TODO above); X0 is None -> no shift.

    B, F = x.shape
    R = params["G1"].shape[0]
    O = params["O1"].shape[0]
    out_dtype = x.dtype if out_dtype is None else out_dtype

    RR = R * R
    Opad = _round_up(max(O, 1), 128)          # internal lane-aligned width
    K = _round_up(RR, 128)                    # expanded kron width (lane-aligned)

    # ---- offline weight folding / expansion (tiny one-time XLA ops) --------
    w1 = params["I1"][0].T @ params["G1"].T @ params["O1"].T            # (F, O)
    w2 = params["G2"].T @ params["O2"].T                                # (RR, O)
    i21_exp = jnp.repeat(params["I2"][1].T, R, axis=1)                  # (F, RR) col k -> k//R
    i20_exp = jnp.tile(params["I2"][0].T, (1, R))                       # (F, RR) col k -> k%R

    w1p = jnp.pad(w1, ((0, 0), (0, Opad - O)))
    i21p = jnp.pad(i21_exp, ((0, 0), (0, K - RR)))
    i20p = jnp.pad(i20_exp, ((0, 0), (0, K - RR)))
    w_all = jnp.concatenate([w1p, i21p, i20p], axis=1).astype(compute_dtype)  # (F, Opad+2K)
    w2p = jnp.pad(w2, ((0, K - RR), (0, Opad - O))).astype(compute_dtype)     # (K, Opad)
    const = jnp.pad(params["const"].astype(jnp.float32).reshape(1, O),
                    ((0, 0), (0, Opad - O)))                                  # (1, Opad) f32

    # ---- batch tiling: >= 2 grid steps whenever batch allows (v7x) ---------
    # (v6e with very large B can raise block_batch to 512-1024.)
    B8 = _round_up(B, 8)
    half = _round_up((B8 + 1) // 2, 8)
    TB = max(8, min(block_batch, half))
    Bp = _round_up(B, TB)
    xp = x if Bp == B else jnp.pad(x, ((0, Bp - B), (0, 0)))   # native dtype, no cast

    Wn = Opad + 2 * K
    x_item = jnp.dtype(x.dtype).itemsize
    c_item = jnp.dtype(compute_dtype).itemsize
    o_item = jnp.dtype(out_dtype).itemsize

    # Explicit VMEM budget: double-buffered x/out tiles + weight blocks
    # + margin for in-kernel intermediates / spills.
    vmem_bytes = (2 * TB * F * x_item
                  + 2 * TB * max(O, 128) * o_item
                  + 2 * F * Wn * c_item
                  + 2 * K * Opad * c_item
                  + 2 * 8 * Opad * 4
                  + 4 * TB * Wn * 4)
    vmem_limit = int(min(max(vmem_bytes + (4 << 20), 16 << 20), 128 << 20))

    flops = 2 * Bp * F * Wn + Bp * K + 2 * Bp * K * Opad + 2 * Bp * Opad
    bytes_accessed = (Bp * F * x_item + F * Wn * c_item + K * Opad * c_item
                      + Opad * 4 + Bp * O * o_item)

    kernel = functools.partial(_taylor_kernel, opad=Opad, kk=K)

    out = pl.pallas_call(
        kernel,
        grid=(Bp // TB,),
        in_specs=[
            pl.BlockSpec((TB, F), lambda i: (i, 0)),        # x tile (native dtype)
            pl.BlockSpec((F, Wn), lambda i: (0, 0)),        # fused [W1 | I2-expanded]
            pl.BlockSpec((K, Opad), lambda i: (0, 0)),      # folded order-2 output chain
            pl.BlockSpec((1, Opad), lambda i: (0, 0)),      # const (f32)
        ],
        out_specs=pl.BlockSpec((TB, O), lambda i: (i, 0)),  # unpadded output lanes
        out_shape=jax.ShapeDtypeStruct((Bp, O), out_dtype),
        compiler_params=pltpu.CompilerParams(
            dimension_semantics=("parallel",),
            vmem_limit_bytes=vmem_limit),
        cost_estimate=pl.CostEstimate(flops=int(flops), transcendentals=0,
                                      bytes_accessed=int(bytes_accessed)),
    )(xp, w_all, w2p, const)

    out = out[:B]
    if num_outputs == 1:
        out = out.squeeze(-1)
    return out, z


# ---------------------- deterministic parameter init -------------------------
def init_params(key, in_features, out_features, rank):
    def xavier(k, shape, fan_in, fan_out):
        bound = (6.0 / (fan_in + fan_out)) ** 0.5
        return jax.random.uniform(k, shape, jnp.float32, -bound, bound)

    ks = jax.random.split(key, 6)
    return {
        "const": jnp.zeros((out_features,), jnp.float32),
        "O1": xavier(ks[0], (out_features, rank), rank, out_features),
        "O2": xavier(ks[1], (out_features, rank), rank, out_features),
        "I1": xavier(ks[2], (1, rank, in_features),
                     rank * in_features, 1 * in_features),
        "I2": xavier(ks[3], (2, rank, in_features),
                     rank * in_features, 2 * in_features),
        "G1": xavier(ks[4], (rank, rank), rank, rank),
        "G2": xavier(ks[5], (rank, rank * rank), rank * rank, rank),
    }


# ------------------------- pure-JAX reference --------------------------------
def _reference_forward(x, p):
    B = x.shape[0]
    y = p["const"][None, :] + ((x @ p["I1"][0].T) @ p["G1"].T) @ p["O1"].T
    b0 = x @ p["I2"][0].T
    a1 = x @ p["I2"][1].T
    kron = (a1[:, :, None] * b0[:, None, :]).reshape(B, -1)   # index a*R + b
    y = y + (kron @ p["G2"].T) @ p["O2"].T
    return y


if __name__ == "__main__":
    num_inputs, num_outputs, rank = 16, 4, 8
    batch = 2

    key = jax.random.PRNGKey(0)
    k_x, k_p = jax.random.split(key)
    x = jax.random.normal(k_x, (batch, num_inputs), jnp.float32)
    params = init_params(k_p, num_inputs, num_outputs, rank)

    ref = _reference_forward(x, params)

    # f32 compute path: tight check of the kernel logic / weight folding.
    out32, z = taylornet_forward(x, params, num_outputs=num_outputs,
                                 compute_dtype=jnp.float32)
    out32 = jax.block_until_ready(out32)
    assert out32.shape == (batch, num_outputs)
    assert jnp.allclose(out32, ref, atol=2e-3, rtol=2e-3), "f32 mismatch vs reference"
    assert jnp.array_equal(z, x)

    # Default bf16-to-MXU path (perf config): sanity check vs f32 reference.
    out_bf, _ = taylornet_forward(x, params, num_outputs=num_outputs)
    out_bf = jax.block_until_ready(out_bf)
    assert out_bf.shape == (batch, num_outputs)
    assert jnp.allclose(out_bf, ref, atol=5e-2, rtol=5e-2), "bf16 mismatch vs reference"

    print("KERNEL_OK")
</pallas_src>

<mosaic_0001>
module attributes {stable_mosaic.version = 11 : i64} {
  func.func @_taylor_kernel(%arg0: i32, %arg1: memref<8x16xf32, #tpu.memory_space<vmem>>, %arg2: memref<16x384xf32, #tpu.memory_space<vmem>>, %arg3: memref<128x128xf32, #tpu.memory_space<vmem>>, %arg4: memref<1x128xf32, #tpu.memory_space<vmem>>, %arg5: memref<8x4xf32, #tpu.memory_space<vmem>>) attributes {dimension_semantics = [#tpu.dimension_semantics<parallel>], iteration_bounds = array<i64: 1>, scalar_prefetch = 0 : i64, scratch_operands = 0 : i64, tpu.core_type = #tpu.core_type<tc>, window_params = [{transform_indices = @transform_0, window_bounds = array<i64: 8, 16>}, {pipeline_mode = #tpu.pipeline_mode<synchronous>, transform_indices = @transform_1, window_bounds = array<i64: 16, 384>}, {pipeline_mode = #tpu.pipeline_mode<synchronous>, transform_indices = @transform_2, window_bounds = array<i64: 128, 128>}, {pipeline_mode = #tpu.pipeline_mode<synchronous>, transform_indices = @transform_3, window_bounds = array<i64: 1, 128>}, {transform_indices = @transform_4, window_bounds = array<i64: 8, 4>}]} {
    %c0 = arith.constant 0 : index
    %c0_0 = arith.constant 0 : index
    %0 = vector.load %arg1[%c0, %c0_0] : memref<8x16xf32, #tpu.memory_space<vmem>>, vector<8x16xf32>
    %c0_1 = arith.constant 0 : index
    %c0_2 = arith.constant 0 : index
    %1 = vector.load %arg2[%c0_1, %c0_2] : memref<16x384xf32, #tpu.memory_space<vmem>>, vector<16x384xf32>
    %cst = arith.constant dense<0.000000e+00> : vector<8x384xf32>
    %2 = tpu.matmul %0, %1, %cst {dimension_numbers = #tpu.dot_dimension_numbers<[1], [0], [0], [1], [0, 0, 1, 1], [], []>} : vector<8x16xf32>, vector<16x384xf32>, vector<8x384xf32> -> vector<8x384xf32>
    %3 = vector.extract_strided_slice %2 {offsets = [0, 0], sizes = [8, 128], strides = [1, 1]} : vector<8x384xf32> to vector<8x128xf32>
    %4 = vector.extract_strided_slice %2 {offsets = [0, 128], sizes = [8, 128], strides = [1, 1]} : vector<8x384xf32> to vector<8x128xf32>
    %5 = vector.extract_strided_slice %2 {offsets = [0, 256], sizes = [8, 128], strides = [1, 1]} : vector<8x384xf32> to vector<8x128xf32>
    %6 = arith.mulf %4, %5 : vector<8x128xf32>
    %c0_3 = arith.constant 0 : index
    %c0_4 = arith.constant 0 : index
    %7 = vector.load %arg3[%c0_3, %c0_4] : memref<128x128xf32, #tpu.memory_space<vmem>>, vector<128x128xf32>
    %cst_5 = arith.constant dense<0.000000e+00> : vector<8x128xf32>
    %8 = tpu.matmul %6, %7, %cst_5 {dimension_numbers = #tpu.dot_dimension_numbers<[1], [0], [0], [1], [0, 0, 1, 1], [], []>} : vector<8x128xf32>, vector<128x128xf32>, vector<8x128xf32> -> vector<8x128xf32>
    %9 = arith.addf %3, %8 : vector<8x128xf32>
    %c0_6 = arith.constant 0 : index
    %c0_7 = arith.constant 0 : index
    %10 = vector.load %arg4[%c0_6, %c0_7] : memref<1x128xf32, #tpu.memory_space<vmem>>, vector<1x128xf32>
    %11 = vector.broadcast %10 : vector<1x128xf32> to vector<8x128xf32>
    %12 = arith.addf %9, %11 : vector<8x128xf32>
    %13 = vector.extract_strided_slice %12 {offsets = [0, 0], sizes = [8, 4], strides = [1, 1]} : vector<8x128xf32> to vector<8x4xf32>
    %c0_8 = arith.constant 0 : index
    %c0_9 = arith.constant 0 : index
    %14 = vector.load %arg5[%c0_8, %c0_9] : memref<8x4xf32, #tpu.memory_space<vmem>>, vector<8x4xf32>
    tpu.vector_store %arg5[%c0_8, %c0_9], %13 {strides = array<i32>} : memref<8x4xf32, #tpu.memory_space<vmem>>, vector<8x4xf32>,
    return
  }
  func.func @transform_0(%arg0: i32) -> (i32, i32) {
    %c0_i32 = arith.constant 0 : i32
    %c0_i32_0 = arith.constant 0 : i32
    return %arg0, %c0_i32 : i32, i32
  }
  func.func @transform_1(%arg0: i32) -> (i32, i32) {
    %c0_i32 = arith.constant 0 : i32
    %c0_i32_0 = arith.constant 0 : i32
    %c0_i32_1 = arith.constant 0 : i32
    return %c0_i32, %c0_i32_0 : i32, i32
  }
  func.func @transform_2(%arg0: i32) -> (i32, i32) {
    %c0_i32 = arith.constant 0 : i32
    %c0_i32_0 = arith.constant 0 : i32
    %c0_i32_1 = arith.constant 0 : i32
    return %c0_i32, %c0_i32_0 : i32, i32
  }
  func.func @transform_3(%arg0: i32) -> (i32, i32) {
    %c0_i32 = arith.constant 0 : i32
    %c0_i32_0 = arith.constant 0 : i32
    %c0_i32_1 = arith.constant 0 : i32
    return %c0_i32, %c0_i32_0 : i32, i32
  }
  func.func @transform_4(%arg0: i32) -> (i32, i32) {
    %c0_i32 = arith.constant 0 : i32
    %c0_i32_0 = arith.constant 0 : i32
    return %arg0, %c0_i32 : i32, i32
  }
}

</mosaic_0001>

<bundles_post_ra>
// kernel: tpu_custom_call.1
= control target key start
LH: loop header
LB: loop body
LE: loop exit
PB: predicated region body
PF: predicated region fallthrough
CT: control target
= control target key end

     0   :  { %9 = vsyncpa [#allocation3], 0  ;;  %s321_s0 = inlined_call_operand.hbm [shape: f32[8,16], index: 0, kind: input, shape index: {}]   ;;  %s322_s1 = inlined_call_operand.hbm [shape: f32[16,384], index: 1, kind: input, shape index: {}]   ;;  %s323_s2 = inlined_call_operand.hbm [shape: f32[128,128], index: 2, kind: input, shape index: {}]   ;;  %s324_s3 = inlined_call_operand.vmem [shape: f32[1,128], index: 3, kind: input, shape index: {}]   ;;  %s325_s4 = inlined_call_operand.vmem [shape: f32[8,4], index: 4, kind: output, shape index: {}]  }
   0x1   :  { %10 = vsyncpa [#allocation5], 0  ;;  %s26_s17 = sshll.u32 %s322_s1, 4  ;;  %s271_s18 = smov [#allocation4]   ;;  %s27_s17 = int_to_ptr.hbm [resolvable:$true] %s26_s17 }
   0x2   :  { %s28_s19 = sshll.u32 %s271_s18, 4  ;;  %s16_s22 = sshll.u32 %s321_s0, 4  ;;  %s29_s19 = int_to_ptr.vmem [resolvable:$true] %s28_s19  ;;  %s17_s22 = int_to_ptr.hbm [resolvable:$true] %s16_s22 }
   0x3   :  { %s272_s23 = smov 384   ;;  %s273_s24 = smov 24  }
   0x4   :  { %34 = dma.hbm_to_vmem [thread:$0]  %s27_s17, 768, %s29_s19, [#allocation5], %s272_s23, %s272_s23, %s273_s24  }
   0x5   :  { %s274_s25 = smov [#allocation2]   ;;  %s39_s29 = sshll.u32 %s323_s2, 4  ;;  %s40_s29 = int_to_ptr.hbm [resolvable:$true] %s39_s29 }
   0x6   :  { %s18_s26 = sshll.u32 %s274_s25, 4  ;;  %s275_s1 = smov [#allocation6]   ;;  %s19_s26 = int_to_ptr.vmem [resolvable:$true] %s18_s26 }
   0x7   :  { %21 = dma.hbm_to_vmem [thread:$0]  %s17_s22, 128, %s19_s26, [#allocation3]  }
   0x8   :  { %s41_s30 = sshll.u32 %s275_s1, 4  ;;  %s276_s5 = smov 128   ;;  %s42_s30 = int_to_ptr.vmem [resolvable:$true] %s41_s30 }
   0x9   :  { %s277_s6 = smov 8  }
   0xa   :  { %47 = dma.hbm_to_vmem [thread:$0]  %s40_s29, 2048, %s42_s30, [#allocation5], %s276_s5, %s276_s5, %s277_s6  }
   0xb   :  { %267 = dma.done.wait [#allocation3], 128  }
   0xc   :  { %268 = vsyncadd [#allocation3], 4294967168 }
   0xd   :  { %269 = dma.done.wait [#allocation5], 2816  }
   0xe   :  { %270 = vsyncadd [#allocation5], 4294964480  ;;  %v68_v0 = vld [vmem:[#allocation4 + $0x28] sm:$0xff]  ;;  %v65_v1 = vld [vmem:[#allocation4 + $0x10] sm:$0xff]  ;;  %vm69_vm0 = vcmask 130048   ;;  %vm176_vm1 = vcmask 31744  }
   0xf   :  { %v62_v2 = vld [vmem:[#allocation2] sm:$0xff]  ;;  %127 = vmatpush.msra.mxu2 %v68_v0  ;;  %v67_v3 = vld [vmem:[#allocation4 + $0x20] sm:$0xff]  ;;  %v64_v4 = vld [vmem:[#allocation4 + $0x8] sm:$0xff] }
  0x10   :  { %v149_v5 = vld [vmem:[#allocation6 + $0x78] sm:$0xff]  ;;  %107 = vmatpush.msra.mxu1 %v67_v3  ;;  %v148_v6 = vld [vmem:[#allocation6 + $0x70] sm:$0xff]  ;;  %v147_v7 = vld [vmem:[#allocation6 + $0x68] sm:$0xff] }
  0x11   :  { %150 = vmatpush.msra.mxu3 %v149_v5  ;;  %128 = vmatpush.msra.mxu2 %v65_v1  ;;  %v146_v8 = vld [vmem:[#allocation6 + $0x60] sm:$0xff]  ;;  %v145_v9 = vld [vmem:[#allocation6 + $0x58] sm:$0xff]  ;;  %v144_v10 = vld [vmem:[#allocation6 + $0x50] sm:$0xff] }
  0x12   :  { %186 = vmatmul.msk.f32.vlgmr.msra.gmra.mxu2 %vm69_vm0, %v62_v2  ;;  %108 = vmatpush.msra.mxu1 %v64_v4  ;;  %v143_v11 = vld [vmem:[#allocation6 + $0x48] sm:$0xff]  ;;  %v142_v12 = vld [vmem:[#allocation6 + $0x40] sm:$0xff]  ;;  %v141_v13 = vld [vmem:[#allocation6 + $0x38] sm:$0xff] }
  0x13   :  { %185 = vmatmul.msk.f32.vlgmr.msra.gmra.mxu1 %vm69_vm0, %v62_v2  ;;  %151 = vmatpush.msra.mxu3 %v148_v6  ;;  %v140_v14 = vld [vmem:[#allocation6 + $0x30] sm:$0xff]  ;;  %v139_v15 = vld [vmem:[#allocation6 + $0x28] sm:$0xff]  ;;  %v138_v16 = vld [vmem:[#allocation6 + $0x20] sm:$0xff] }
  0x14   :  { %v137_v17 = vld [vmem:[#allocation6 + $0x18] sm:$0xff]  ;;  %v136_v18 = vld [vmem:[#allocation6 + $0x10] sm:$0xff]  ;;  %v135_v19 = vld [vmem:[#allocation6 + $0x8] sm:$0xff] }
  0x15   :  { %152 = vmatpush.msra.mxu3 %v147_v7  ;;  %v134_v20 = vld [vmem:[#allocation6] sm:$0xff]  ;;  %v66_v21 = vld [vmem:[#allocation4 + $0x18] sm:$0xff]  ;;  %v63_v22 = vld [vmem:[#allocation4] sm:$0xff] }
  0x16   :  { %87 = vmatpush.msra.mxu0 %v66_v21  ;;  %v194_v27 = vld [vmem:[%s324_s3] ss:$0 sm:$0xff] }
  0x17   :  { %153 = vmatpush.msra.mxu3 %v146_v8 }
  0x18   :  { %88 = vmatpush.msra.mxu0 %v63_v22 }
  0x19   :  { %154 = vmatpush.msra.mxu3 %v145_v9  ;;  %184 = vmatmul.msk.f32.vlgmr.msra.gmra.mxu0 %vm69_vm0, %v62_v2 }
  0x1b   :  { %155 = vmatpush.msra.mxu3 %v144_v10 }
  0x1d   :  { %156 = vmatpush.msra.mxu3 %v143_v11 }
  0x1f   :  { %157 = vmatpush.msra.mxu3 %v142_v12 }
  0x21   :  { %158 = vmatpush.msra.mxu3 %v141_v13 }
  0x23   :  { %159 = vmatpush.msra.mxu3 %v140_v14 }
  0x25   :  { %160 = vmatpush.msra.mxu3 %v139_v15 }
  0x27   :  { %161 = vmatpush.msra.mxu3 %v138_v16 }
  0x29   :  { %162 = vmatpush.msra.mxu3 %v137_v17 }
  0x2b   :  { %163 = vmatpush.msra.mxu3 %v136_v18 }
  0x2d   :  { %164 = vmatpush.msra.mxu3 %v135_v19 }
  0x2f   :  { %165 = vmatpush.msra.mxu3 %v134_v20 }
  0x90   :  { %v110_v23 = vpop.f32.mrf.mxu1 }
  0x95   :  { %v130_v24 = vpop.f32.mrf.mxu2 }
  0x96   :  { %v133_v25 = vmul.f32 %v130_v24, %v110_v23  ;;  %v90_v26 = vpop.f32.mrf.mxu0 }
  0x98   :  { %166 = vmatmul.f32.vlgmr.msra.gmra.mxu3 %v133_v25 }
 0x11b   :  { %v167_v28 = vpop.f32.mrf.mxu3 }
 0x11c   :  { %v170_v29 = vadd.f32 %v167_v28, %v90_v26 }
 0x11e   :  { %v175_v30 = vadd.f32 %v194_v27, %v170_v29 }
 0x120   :  { %177 = vst.msk [vmem:[%s325_s4] sm:$0xff] %vm176_vm1, %v175_v30 }
 0x121   :  { %182 = vsyncpa [#allocation3], 1 }
 0x122   :  { %183 = vsyncpa [#allocation5], 1 }

</bundles_post_ra>
